<compile_context>
chip_gen: v7x
topology: tpu7x:2x2x1
jax: 0.10.0
libtpu: 0.0.40
codegen_flags: <defaults>
</compile_context>

<pallas_src>
import functools

import jax
import jax.numpy as jnp
from jax import lax
from jax.experimental import pallas as pl
from jax.experimental.pallas import tpu as pltpu


_EPS = 1e-12  # torch F.normalize clamp_min eps


def _round_up(v, mult):
    return ((v + mult - 1) // mult) * mult


# ---------------------------------------------------------------------------
# Kernels
# ---------------------------------------------------------------------------
def _cosface_kernel_label(x_ref, w_ref, sx_ref, sw_ref, lbl_ref, out_ref, *, sm):
    """One (TM, TN) output tile, margin applied on the true class.

    x_ref : (TM, D)  bf16   raw (un-normalized) features
    w_ref : (TN, D)  bf16   raw (un-normalized) class weights
    sx_ref: (TM, 1)  f32    s / max(||x_i||, eps)   (s folded in)
    sw_ref: (1, TN)  f32    1 / max(||w_j||, eps)
    lbl_ref:(TM, 1)  int32  class labels (-1 for padded rows)
    """
    dot = lax.dot_general(
        x_ref[...], w_ref[...],
        dimension_numbers=(((1,), (1,)), ((), ())),
        preferred_element_type=jnp.float32,          # MXU, f32 accumulation
    )                                                # (TM, TN)
    logits = dot * (sx_ref[...] * sw_ref[...])       # s * cosine

    tn = out_ref.shape[1]
    col = pl.program_id(1) * tn + lax.broadcasted_iota(jnp.int32, logits.shape, 1)
    out_ref[...] = jnp.where(col == lbl_ref[...], logits - sm, logits).astype(out_ref.dtype)


def _cosface_kernel_nolabel(x_ref, w_ref, sx_ref, sw_ref, out_ref):
    dot = lax.dot_general(
        x_ref[...], w_ref[...],
        dimension_numbers=(((1,), (1,)), ((), ())),
        preferred_element_type=jnp.float32,
    )
    out_ref[...] = (dot * (sx_ref[...] * sw_ref[...])).astype(out_ref.dtype)


# ---------------------------------------------------------------------------
# Wrapper
# ---------------------------------------------------------------------------
def cosine_margin_product(x, weight, label=None, *, s=30.0, m=0.35,
                          block_b=256, block_c=512):
    """Forward pass of CosineMarginProduct.

    x:      (B, in_feature)
    weight: (out_feature, in_feature)
    label:  optional (B,) int class indices
    returns (B, out_feature) float32
    """
    x = jnp.asarray(x)
    weight = jnp.asarray(weight)
    B, D = x.shape
    C, Dw = weight.shape
    assert D == Dw, "in_feature mismatch"

    # ---- tiny prior pass: inverse L2 norms (torch F.normalize semantics:
    # x / max(||x||, eps)).  rsqrt + clamp on the squared norm == 1/max(||.||,eps).
    xf = x.astype(jnp.float32)
    wf = weight.astype(jnp.float32)
    inv_nx = lax.rsqrt(jnp.maximum(jnp.sum(xf * xf, axis=-1, keepdims=True),
                                   _EPS * _EPS))                       # (B, 1)
    inv_nw = lax.rsqrt(jnp.maximum(jnp.sum(wf * wf, axis=-1),
                                   _EPS * _EPS))[None, :]              # (1, C)
    inv_nx = s * inv_nx   # fold the s scale into the row factor

    # ---- tile sizes: TM multiple of 8 (sublanes), TN multiple of 128 (lanes).
    TM = min(block_b, _round_up(B, 8))
    TN = min(block_c, _round_up(C, 128))
    B_pad = _round_up(B, TM)
    C_pad = _round_up(C, TN)

    # ---- bf16 operands for the MXU (halves input HBM traffic too); pad to tiles.
    x_mm = jnp.pad(x.astype(jnp.bfloat16), ((0, B_pad - B), (0, 0)))
    w_mm = jnp.pad(weight.astype(jnp.bfloat16), ((0, C_pad - C), (0, 0)))
    inv_nx = jnp.pad(inv_nx, ((0, B_pad - B), (0, 0)))
    inv_nw = jnp.pad(inv_nw, ((0, 0), (0, C_pad - C)))

    grid = (B_pad // TM, C_pad // TN)

    cost = pl.CostEstimate(
        flops=2 * B_pad * C_pad * D,
        transcendentals=0,
        bytes_accessed=B_pad * D * 2 + C_pad * D * 2 + B_pad * C_pad * 4,
    )
    cparams = pltpu.CompilerParams(
        dimension_semantics=("parallel", "parallel"),  # megacore-friendly (v7x)
    )

    x_spec = pl.BlockSpec((TM, D), lambda i, j: (i, 0))
    w_spec = pl.BlockSpec((TN, D), lambda i, j: (j, 0))
    sx_spec = pl.BlockSpec((TM, 1), lambda i, j: (i, 0))
    sw_spec = pl.BlockSpec((1, TN), lambda i, j: (0, j))
    out_spec = pl.BlockSpec((TM, TN), lambda i, j: (i, j))
    out_shape = jax.ShapeDtypeStruct((B_pad, C_pad), jnp.float32)

    if label is None:
        out = pl.pallas_call(
            _cosface_kernel_nolabel,
            out_shape=out_shape,
            grid=grid,
            in_specs=[x_spec, w_spec, sx_spec, sw_spec],
            out_specs=out_spec,
            compiler_params=cparams,
            cost_estimate=cost,
        )(x_mm, w_mm, inv_nx, inv_nw)
    else:
        lbl = jnp.full((B_pad, 1), -1, dtype=jnp.int32)
        lbl = lbl.at[:B, 0].set(jnp.asarray(label).astype(jnp.int32).reshape(-1))
        lbl_spec = pl.BlockSpec((TM, 1), lambda i, j: (i, 0))
        out = pl.pallas_call(
            functools.partial(_cosface_kernel_label, sm=s * m),
            out_shape=out_shape,
            grid=grid,
            in_specs=[x_spec, w_spec, sx_spec, sw_spec, lbl_spec],
            out_specs=out_spec,
            compiler_params=cparams,
            cost_estimate=cost,
        )(x_mm, w_mm, inv_nx, inv_nw, lbl)

    return out[:B, :C]


def xavier_uniform(key, shape, dtype=jnp.float32):
    fan_out, fan_in = shape
    bound = (6.0 / (fan_in + fan_out)) ** 0.5
    return jax.random.uniform(key, shape, dtype=dtype, minval=-bound, maxval=bound)


# ---------------------------------------------------------------------------
# Demo / correctness check
# ---------------------------------------------------------------------------
if __name__ == "__main__":
    key = jax.random.PRNGKey(0)
    k1, k2, k3, k4, k5 = jax.random.split(key, 5)
    s, m = 30.0, 0.35

    # Case 1: module defaults (in_feature=512, out_feature=10), batch 8, with
    # label -> exercises the padding path (C padded 10 -> 128).
    B1, D1, C1 = 8, 512, 10
    x1 = jax.random.normal(k1, (B1, D1), dtype=jnp.float32)
    w1 = xavier_uniform(k2, (C1, D1))
    y1 = jax.random.randint(k3, (B1,), 0, C1, dtype=jnp.int32)
    out1 = cosine_margin_product(x1, w1, y1, s=s, m=m)

    # Case 2: aligned shapes, no label, small tiles to force a (2, 2) grid
    # (checks global-column indexing and multi-tile pipelining).
    B2, D2, C2 = 16, 128, 256
    x2 = jax.random.normal(k4, (B2, D2), dtype=jnp.float32)
    w2 = xavier_uniform(k5, (C2, D2))
    out2 = cosine_margin_product(x2, w2, None, s=s, m=m, block_b=8, block_c=128)

    jax.block_until_ready((out1, out2))

    # Plain-JAX reference (f32 end-to-end).
    def ref(x, w, label):
        xn = x / jnp.maximum(jnp.linalg.norm(x, axis=-1, keepdims=True), _EPS)
        wn = w / jnp.maximum(jnp.linalg.norm(w, axis=-1, keepdims=True), _EPS)
        cosine = xn @ wn.T
        if label is None:
            return s * cosine
        one_hot = jax.nn.one_hot(label, w.shape[0], dtype=cosine.dtype)
        return s * (cosine - one_hot * m)

    r1 = ref(x1, w1, y1)
    r2 = ref(x2, w2, None)

    assert out1.shape == (B1, C1) and out2.shape == (B2, C2)
    # bf16 MXU operands with f32 accumulation: tolerance loosened accordingly.
    assert jnp.allclose(out1, r1, atol=1e-1, rtol=1e-2), float(jnp.max(jnp.abs(out1 - r1)))
    assert jnp.allclose(out2, r2, atol=1e-1, rtol=1e-2), float(jnp.max(jnp.abs(out2 - r2)))

    print("KERNEL_OK")
</pallas_src>

<mosaic_0001>
module attributes {stable_mosaic.version = 11 : i64} {
  func.func @_cosface_kernel_label(%arg0: i32, %arg1: i32, %arg2: memref<8x512xbf16, #tpu.memory_space<vmem>>, %arg3: memref<128x512xbf16, #tpu.memory_space<vmem>>, %arg4: memref<8x1xf32, #tpu.memory_space<vmem>>, %arg5: memref<1x128xf32, #tpu.memory_space<vmem>>, %arg6: memref<8x1xi32, #tpu.memory_space<vmem>>, %arg7: memref<8x128xf32, #tpu.memory_space<vmem>>) attributes {dimension_semantics = [#tpu.dimension_semantics<parallel>, #tpu.dimension_semantics<parallel>], iteration_bounds = array<i64: 1, 1>, scalar_prefetch = 0 : i64, scratch_operands = 0 : i64, tpu.core_type = #tpu.core_type<tc>, window_params = [{transform_indices = @transform_0, window_bounds = array<i64: 8, 512>}, {transform_indices = @transform_1, window_bounds = array<i64: 128, 512>}, {transform_indices = @transform_2, window_bounds = array<i64: 8, 1>}, {transform_indices = @transform_3, window_bounds = array<i64: 1, 128>}, {transform_indices = @transform_4, window_bounds = array<i64: 8, 1>}, {transform_indices = @transform_5, window_bounds = array<i64: 8, 128>}]} {
    %c0 = arith.constant 0 : index
    %c0_0 = arith.constant 0 : index
    %0 = vector.load %arg2[%c0, %c0_0] : memref<8x512xbf16, #tpu.memory_space<vmem>>, vector<8x512xbf16>
    %c0_1 = arith.constant 0 : index
    %c0_2 = arith.constant 0 : index
    %1 = vector.load %arg3[%c0_1, %c0_2] : memref<128x512xbf16, #tpu.memory_space<vmem>>, vector<128x512xbf16>
    %cst = arith.constant dense<0.000000e+00> : vector<8x128xf32>
    %2 = tpu.matmul %0, %1, %cst {dimension_numbers = #tpu.dot_dimension_numbers<[1], [1], [0], [0], [0, 0, 1, 0], [], []>} : vector<8x512xbf16>, vector<128x512xbf16>, vector<8x128xf32> -> vector<8x128xf32>
    %c0_3 = arith.constant 0 : index
    %c0_4 = arith.constant 0 : index
    %3 = vector.load %arg4[%c0_3, %c0_4] : memref<8x1xf32, #tpu.memory_space<vmem>>, vector<8x1xf32>
    %c0_5 = arith.constant 0 : index
    %c0_6 = arith.constant 0 : index
    %4 = vector.load %arg5[%c0_5, %c0_6] : memref<1x128xf32, #tpu.memory_space<vmem>>, vector<1x128xf32>
    %5 = vector.broadcast %3 : vector<8x1xf32> to vector<8x128xf32>
    %6 = vector.broadcast %4 : vector<1x128xf32> to vector<8x128xf32>
    %7 = arith.mulf %5, %6 : vector<8x128xf32>
    %8 = arith.mulf %2, %7 : vector<8x128xf32>
    %c128_i32 = arith.constant 128 : i32
    %9 = arith.muli %arg1, %c128_i32 : i32
    %10 = tpu.iota {dimensions = array<i32: 1>} : vector<8x128xi32>
    %11 = vector.broadcast %9 : i32 to vector<8x128xi32>
    %12 = arith.addi %11, %10 : vector<8x128xi32>
    %c0_7 = arith.constant 0 : index
    %c0_8 = arith.constant 0 : index
    %13 = vector.load %arg6[%c0_7, %c0_8] : memref<8x1xi32, #tpu.memory_space<vmem>>, vector<8x1xi32>
    %14 = vector.broadcast %13 : vector<8x1xi32> to vector<8x128xi32>
    %15 = arith.cmpi eq, %12, %14 : vector<8x128xi32>
    %cst_9 = arith.constant 1.050000e+01 : f32
    %16 = vector.broadcast %cst_9 : f32 to vector<8x128xf32>
    %17 = arith.subf %8, %16 : vector<8x128xf32>
    %18 = arith.select %15, %17, %8 : vector<8x128xi1>, vector<8x128xf32>
    %c0_10 = arith.constant 0 : index
    %c0_11 = arith.constant 0 : index
    %19 = vector.load %arg7[%c0_10, %c0_11] : memref<8x128xf32, #tpu.memory_space<vmem>>, vector<8x128xf32>
    tpu.vector_store %arg7[%c0_10, %c0_11], %18 {strides = array<i32>} : memref<8x128xf32, #tpu.memory_space<vmem>>, vector<8x128xf32>,
    return
  }
  func.func @transform_0(%arg0: i32, %arg1: i32) -> (i32, i32) {
    %c0_i32 = arith.constant 0 : i32
    %c0_i32_0 = arith.constant 0 : i32
    return %arg0, %c0_i32 : i32, i32
  }
  func.func @transform_1(%arg0: i32, %arg1: i32) -> (i32, i32) {
    %c0_i32 = arith.constant 0 : i32
    %c0_i32_0 = arith.constant 0 : i32
    return %arg1, %c0_i32 : i32, i32
  }
  func.func @transform_2(%arg0: i32, %arg1: i32) -> (i32, i32) {
    %c0_i32 = arith.constant 0 : i32
    %c0_i32_0 = arith.constant 0 : i32
    return %arg0, %c0_i32 : i32, i32
  }
  func.func @transform_3(%arg0: i32, %arg1: i32) -> (i32, i32) {
    %c0_i32 = arith.constant 0 : i32
    %c0_i32_0 = arith.constant 0 : i32
    return %c0_i32, %arg1 : i32, i32
  }
  func.func @transform_4(%arg0: i32, %arg1: i32) -> (i32, i32) {
    %c0_i32 = arith.constant 0 : i32
    %c0_i32_0 = arith.constant 0 : i32
    return %arg0, %c0_i32 : i32, i32
  }
  func.func @transform_5(%arg0: i32, %arg1: i32) -> (i32, i32) {
    %c0_i32 = arith.constant 0 : i32
    return %arg0, %arg1 : i32, i32
  }
}

</mosaic_0001>

<bundles_post_ra>
// kernel: tpu_custom_call.1
= control target key start
LH: loop header
LB: loop body
LE: loop exit
PB: predicated region body
PF: predicated region fallthrough
CT: control target
= control target key end

     0   :  { %10 = vsyncpa [#allocation3], 0  ;;  %s586_s0 = inlined_call_operand.vmem [shape: bf16[8,512], index: 0, kind: input, shape index: {}]   ;;  %s587_s1 = inlined_call_operand.hbm [shape: bf16[128,512], index: 1, kind: input, shape index: {}]   ;;  %s588_s2 = inlined_call_operand.vmem [shape: f32[8,1], index: 2, kind: input, shape index: {}]   ;;  %s589_s3 = inlined_call_operand.vmem [shape: f32[1,128], index: 3, kind: input, shape index: {}]   ;;  %s590_s4 = inlined_call_operand.vmem [shape: s32[8,1], index: 4, kind: input, shape index: {}]   ;;  %s591_s5 = inlined_call_operand.hbm [shape: f32[8,128], index: 5, kind: output, shape index: {}]  }
   0x1   :  { %11 = vsyncpa [#allocation4], 0  ;;  %s512_s18 = smov [#allocation2]   ;;  %s464_s22 = scalar_lea.hbm %s587_s1, 4096 }
   0x2   :  { %s19_s19 = sshll.u32 %s512_s18, 4  ;;  %p465_p0 = scmp.ne.s32.totalorder %s587_s1, %s464_s22  ;;  %s20_s19 = int_to_ptr.vmem [resolvable:$true] %s19_s19 }
   0x3   :  { %p468_p1 = scmp.lt.u32.totalorder %s464_s22, %s587_s1 }
   0x5   :  { %p470_p2 = pnand %p468_p1, %p465_p0 }
   0x7   :  { %473 = shalt.err (!%p470_p2)
}
   0x8   :  { %s474_s27 = scalar_lea.vmem %s20_s19, 4096  ;;  %p479_p4 = scmp.lt.s32.totalorder %s20_s19, %s20_s19 }
   0x9   :  { %p475_p3 = scmp.ne.s32.totalorder %s20_s19, %s474_s27  ;;  %p480_p5 = scmp.lt.s32.totalorder %s474_s27, %s474_s27 }
   0xb   :  { %p481_p6 = por %p480_p5, %p479_p4 }
   0xd   :  { %p482_p7 = pnand %p481_p6, %p475_p3 }
   0xf   :  { %485 = shalt.err (!%p482_p7)
}
  0x10   :  { %s513_s28 = smov 256   ;;  %s514_s29 = smov 16  }
  0x11   :  { %25 = dma.hbm_to_vmem [thread:$0]  %s587_s1, 4096, %s20_s19, [#allocation3], %s513_s28, %s513_s28, %s514_s29  }
  0x12   :  { %508 = dma.done.wait [#allocation3], 4096  }
  0x13   :  { %509 = vsyncadd [#allocation3], 4294963200  ;;  %v515_v0 = vmov 0   ;;  %v412_v1 = vld [vmem:[#allocation2 + $0x4] ss:$16 sps:$4 sm:$0xff]   ;;  %v37_v16 = vld [vmem:[%s586_s0 + $0x8] sm:$0xff]  ;;  %v340_v43 = vlaneseq }
  0x14   :  { %411 = vset.pattern.permute.xlu0 %v515_v0  ;;  %v414_v2 = vld [vmem:[#allocation2 + $0xc] ss:$16 sps:$4 sm:$0xff]   ;;  %244 = vmatprep.subr.bf16.mxu1 %v412_v1  ;;  %v416_v3 = vld [vmem:[#allocation2] ss:$16 sps:$4 sm:$0xff]   ;;  %v417_v4 = vld [vmem:[#allocation2 + $0x8] ss:$16 sps:$4 sm:$0xff]   ;;  %v370_v18 = vcombine.high %v37_v16, %v37_v16  ;;  %v369_v40 = vcombine.low %v37_v16, %v37_v16 }
  0x15   :  { %284 = vmatprep.subr.bf16.mxu0 %v414_v2  ;;  %v418_v5 = vld [vmem:[#allocation2 + $0x24] ss:$16 sps:$4 sm:$0xff]   ;;  %245 = vmatpush1.bf16.xpose.msra.mxu1 %v416_v3  ;;  %v420_v6 = vld [vmem:[#allocation2 + $0x2c] ss:$16 sps:$4 sm:$0xff]   ;;  %v422_v7 = vld [vmem:[#allocation2 + $0x20] ss:$16 sps:$4 sm:$0xff]  }
  0x16   :  { %285 = vmatpush1.bf16.xpose.msra.mxu0 %v417_v4  ;;  %246 = vmatprep.subr.bf16.mxu1 %v418_v5  ;;  %v423_v8 = vld [vmem:[#allocation2 + $0x28] ss:$16 sps:$4 sm:$0xff]   ;;  %v424_v9 = vld [vmem:[#allocation2 + $0x44] ss:$16 sps:$4 sm:$0xff]   ;;  %v426_v10 = vld [vmem:[#allocation2 + $0x4c] ss:$16 sps:$4 sm:$0xff]  }
  0x17   :  { %286 = vmatprep.subr.bf16.mxu0 %v420_v6  ;;  %v428_v11 = vld [vmem:[#allocation2 + $0x40] ss:$16 sps:$4 sm:$0xff]   ;;  %v429_v12 = vld [vmem:[#allocation2 + $0x48] ss:$16 sps:$4 sm:$0xff]   ;;  %v430_v13 = vld [vmem:[#allocation2 + $0x64] ss:$16 sps:$4 sm:$0xff]   ;;  %316 = vmatprep.mubr.bf16.mxu0 %v370_v18 }
  0x18   :  { %v432_v14 = vld [vmem:[#allocation2 + $0x6c] ss:$16 sps:$4 sm:$0xff]   ;;  %v36_v15 = vld [vmem:[%s586_s0] sm:$0xff]  ;;  %v435_v21 = vld [vmem:[#allocation2 + $0x68] ss:$16 sps:$4 sm:$0xff]   ;;  %v341_v51 = vand.u32 127, %v340_v43 }
  0x19   :  { %v368_v17 = vcombine.high %v36_v15, %v36_v15  ;;  %v324_v19 = vld [vmem:[%s588_s2] sm:$0xff]  ;;  %v438_v24 = vld [vmem:[#allocation2 + $0x8c] ss:$16 sps:$4 sm:$0xff]   ;;  %v441_v26 = vld [vmem:[#allocation2 + $0x88] ss:$16 sps:$4 sm:$0xff]   ;;  %v367_v39 = vcombine.low %v36_v15, %v36_v15 }
  0x1a   :  { %328 = vperm.xlu0 %411, %v324_v19   ;;  %v434_v20 = vld [vmem:[#allocation2 + $0x60] ss:$16 sps:$4 sm:$0xff]   ;;  %v436_v23 = vld [vmem:[#allocation2 + $0x84] ss:$16 sps:$4 sm:$0xff]   ;;  %v444_v28 = vld [vmem:[#allocation2 + $0xac] ss:$16 sps:$4 sm:$0xff]  }
  0x1b   :  { %276 = vmatprep.mubr.bf16.mxu1 %v368_v17  ;;  %v344_v22 = vld [vmem:[%s590_s4] sm:$0xff]  ;;  %v447_v30 = vld [vmem:[#allocation2 + $0xa8] ss:$16 sps:$4 sm:$0xff]   ;;  %v450_v32 = vld [vmem:[#allocation2 + $0xcc] ss:$16 sps:$4 sm:$0xff]   ;;  %s516_s4 = smov [#allocation5]  }
  0x1c   :  { %v440_v25 = vld [vmem:[#allocation2 + $0x80] ss:$16 sps:$4 sm:$0xff]   ;;  %v442_v27 = vld [vmem:[#allocation2 + $0xa4] ss:$16 sps:$4 sm:$0xff]   ;;  %v453_v34 = vld [vmem:[#allocation2 + $0xc8] ss:$16 sps:$4 sm:$0xff]  }
  0x1d   :  { %247 = vmatpush1.bf16.xpose.msra.mxu1 %v422_v7  ;;  %v446_v29 = vld [vmem:[#allocation2 + $0xa0] ss:$16 sps:$4 sm:$0xff]   ;;  %v448_v31 = vld [vmem:[#allocation2 + $0xc4] ss:$16 sps:$4 sm:$0xff]   ;;  %v456_v36 = vld [vmem:[#allocation2 + $0xec] ss:$16 sps:$4 sm:$0xff]  }
  0x1e   :  { %287 = vmatpush1.bf16.xpose.msra.mxu0 %v423_v8  ;;  %248 = vmatprep.subr.bf16.mxu1 %v424_v9  ;;  %v452_v33 = vld [vmem:[#allocation2 + $0xc0] ss:$16 sps:$4 sm:$0xff]   ;;  %v454_v35 = vld [vmem:[#allocation2 + $0xe4] ss:$16 sps:$4 sm:$0xff]   ;;  %v459_v38 = vld [vmem:[#allocation2 + $0xe8] ss:$16 sps:$4 sm:$0xff]  }
  0x1f   :  { %288 = vmatprep.subr.bf16.mxu0 %v426_v10  ;;  %346 = vperm.xlu0 %411, %v344_v22   ;;  %v458_v37 = vld [vmem:[#allocation2 + $0xe0] ss:$16 sps:$4 sm:$0xff]   ;;  %s358_s14 = sshll.u32 %s516_s4, 4  ;;  %s359_s14 = int_to_ptr.vmem [resolvable:$true] %s358_s14 }
  0x20   :  { %v403_v42 = vld [vmem:[%s589_s3] ss:$0 sm:$0xff]  ;;  %s486_s3 = scalar_lea.vmem %s359_s14, 128  ;;  %p491_p9 = scmp.lt.s32.totalorder %s359_s14, %s359_s14 }
  0x21   :  { %p487_p8 = scmp.ne.s32.totalorder %s359_s14, %s486_s3  ;;  %p492_p10 = scmp.lt.s32.totalorder %s486_s3, %s486_s3 }
  0x23   :  { %p493_p11 = por %p492_p10, %p491_p9 }
  0x25   :  { %249 = vmatpush1.bf16.xpose.msra.mxu1 %v428_v11  ;;  %p494_p12 = pnand %p493_p11, %p487_p8 }
  0x26   :  { %289 = vmatpush1.bf16.xpose.msra.mxu0 %v429_v12  ;;  %250 = vmatprep.subr.bf16.mxu1 %v430_v13 }
  0x27   :  { %290 = vmatprep.subr.bf16.mxu0 %v432_v14 }
  0x2d   :  { %251 = vmatpush1.bf16.xpose.msra.mxu1 %v434_v20 }
  0x2e   :  { %291 = vmatpush1.bf16.xpose.msra.mxu0 %v435_v21  ;;  %252 = vmatprep.subr.bf16.mxu1 %v436_v23 }
  0x2f   :  { %292 = vmatprep.subr.bf16.mxu0 %v438_v24 }
  0x35   :  { %253 = vmatpush1.bf16.xpose.msra.mxu1 %v440_v25 }
  0x36   :  { %293 = vmatpush1.bf16.xpose.msra.mxu0 %v441_v26  ;;  %254 = vmatprep.subr.bf16.mxu1 %v442_v27 }
  0x37   :  { %294 = vmatprep.subr.bf16.mxu0 %v444_v28 }
  0x3d   :  { %255 = vmatpush1.bf16.xpose.msra.mxu1 %v446_v29 }
  0x3e   :  { %295 = vmatpush1.bf16.xpose.msra.mxu0 %v447_v30  ;;  %256 = vmatprep.subr.bf16.mxu1 %v448_v31 }
  0x3f   :  { %296 = vmatprep.subr.bf16.mxu0 %v450_v32 }
  0x45   :  { %257 = vmatpush1.bf16.xpose.msra.mxu1 %v452_v33 }
  0x46   :  { %297 = vmatpush1.bf16.xpose.msra.mxu0 %v453_v34  ;;  %258 = vmatprep.subr.bf16.mxu1 %v454_v35 }
  0x47   :  { %298 = vmatprep.subr.bf16.mxu0 %v456_v36 }
  0x4d   :  { %259 = vmatpush1.bf16.xpose.msra.mxu1 %v458_v37 }
  0x4e   :  { %299 = vmatpush1.bf16.xpose.msra.mxu0 %v459_v38 }
  0x54   :  { %277 = vmatmul.mubr.bf16.vlgmr.msra.gmra.mrb[0].mxu1 %v367_v39 }
  0x55   :  { %317 = vmatmul.mubr.bf16.vlgmr.msra.gmra.mrb[0].mxu0 %v369_v40 }
  0x99   :  { %v329_v41 = vpop.permute.xlu0 %328 }
  0x9a   :  { %v337_v44 = vmul.f32 %v403_v42, %v329_v41 }
  0x9e   :  { %v347_v45 = vpop.permute.xlu0 %346 }
  0x9f   :  { %vm348_vm0 = vcmp.eq.s32.totalorder %v341_v51, %v347_v45 }
 0x127   :  { %v278_v46 = vpop.f32.mrb[0].mxu1 }
 0x128   :  { %v318_v47 = vpop.f32.mrb[0].mxu0  ;;  %v280_v49 = vpop.f32.mrb[1].mxu1 }
 0x129   :  { %v319_v48 = vadd.f32 %v318_v47, %v278_v46  ;;  %v320_v50 = vpop.f32.mrb[1].mxu0  ;;  %v281_v52 = vpop.f32.mrb[2].mxu1 }
 0x12a   :  { %v321_v53 = vpop.f32.mrb[2].mxu0  ;;  %v282_v55 = vpop.f32.mrb[3].mxu1 }
 0x12b   :  { %v338_v54 = vmul.f32 %v337_v44, %v319_v48  ;;  %v322_v56 = vpop.f32.mrb[3].mxu0 }
 0x12d   :  { %v404_v57 = vadd.f32 -10.5, %v338_v54 }
 0x12f   :  { %v350_v58 = vsel %vm348_vm0, %v404_v57, %v338_v54 }
 0x130   :  { %351 = vst [vmem:[#allocation5] sm:$0xff] %v350_v58 }
 0x131   :  { %497 = shalt.err (!%p494_p12)
}
 0x132   :  { %s498_s17 = scalar_lea.hbm %s591_s5, 128 }
 0x133   :  { %p499_p13 = scmp.ne.s32.totalorder %s591_s5, %s498_s17  ;;  %p502_p0 = scmp.lt.u32.totalorder %s498_s17, %s591_s5 }
 0x135   :  { %p504_p1 = pnand %p502_p0, %p499_p13 }
 0x137   :  { %507 = shalt.err (!%p504_p1)
}
 0x138   :  { %361 = dma.vmem_to_hbm [thread:$0]  %s359_s14, 128, %s591_s5, [#allocation4]  }
 0x139   :  { %510 = dma.done.wait [#allocation4], 128  }
 0x13a   :  { %511 = vsyncadd [#allocation4], 4294967168 }
 0x13b   :  { %365 = vsyncpa [#allocation3], 1 }
 0x13c   :  { %366 = vsyncpa [#allocation4], 1 }

</bundles_post_ra>
